<compile_context>
chip_gen: v5e
topology: v5e:2x2
jax: 0.10.0
libtpu: 0.0.40
codegen_flags: <defaults>
</compile_context>

<pallas_src>
import jax
import jax.numpy as jnp
from jax.experimental import pallas as pl
from jax.experimental.pallas import tpu as pltpu

_LANE = 128
_SUBLANE = 8


def _piecewise_relu_kernel(x_ref, o_ref):
    # y = x + relu((x - 1)/2) + relu((-1 - x)/2)  ==  x + 0.5 * relu(|x| - 1)
    x = x_ref[...]
    half = jnp.asarray(0.5, dtype=x.dtype)
    one = jnp.asarray(1.0, dtype=x.dtype)
    zero = jnp.asarray(0.0, dtype=x.dtype)
    o_ref[...] = x + half * jnp.maximum(jnp.abs(x) - one, zero)


def _piecewise_relu_jnp(x):
    # Plain-JAX path for tiny tensors / ragged tails (same math, same dtype).
    half = jnp.asarray(0.5, dtype=x.dtype)
    one = jnp.asarray(1.0, dtype=x.dtype)
    zero = jnp.asarray(0.0, dtype=x.dtype)
    return x + half * jnp.maximum(jnp.abs(x) - one, zero)


def _pick_block_bytes():
    """Per-generation block-size target (bytes per grid step)."""
    kind = ""
    try:
        kind = jax.devices()[0].device_kind.lower()
    except Exception:
        pass
    if "v7" in kind or "7x" in kind:
        return 8 << 20   # v7x: ~3.2 TB/s HBM -> big blocks to hide per-step overhead
    if "v6" in kind:
        return 6 << 20   # v6e: 128 MiB VMEM, plenty of headroom
    if "v5" in kind:
        return 3 << 20   # v5e: stay safely inside 16 MiB scoped-VMEM default
    return 4 << 20


def piecewise_relu(x, *, max_lane_width=1024):
    """Apply PiecewiseReLU elementwise to a floating-point array of any shape."""
    orig_shape = x.shape
    dtype = x.dtype
    assert jnp.issubdtype(dtype, jnp.floating), "piecewise_relu expects a float dtype"
    n = x.size
    itemsize = jnp.dtype(dtype).itemsize

    # Lane-dense slab width: a wide multiple of 128 (narrower for tiny inputs).
    w = min(max_lane_width, max(_LANE, (n // _SUBLANE) // _LANE * _LANE))
    chunk = _SUBLANE * w                 # bulk granularity: 8 rows of W lanes
    n_bulk = (n // chunk) * chunk        # divisible bulk goes through the kernel
    n_tail = n - n_bulk                  # < 8*W ragged tail handled with jnp

    flat = x.reshape(-1)

    if n_bulk == 0:
        # Tensor smaller than one (8, W) tile: kernel overhead isn't worth it.
        return _piecewise_relu_jnp(flat).reshape(orig_shape)

    rows = n_bulk // w                   # multiple of 8 by construction
    slab = flat[:n_bulk].reshape(rows, w)
    slab_bytes = rows * w * itemsize

    # Tile sizing: generation-aware block budget, >=4 steps for mid/large
    # tensors (so in/out DMAs overlap), best-effort even step count for v7x's
    # two TensorCores sharing the "parallel" grid axis.
    block_bytes = _pick_block_bytes()
    max_tile_rows = max(_SUBLANE, (block_bytes // (w * itemsize)) // _SUBLANE * _SUBLANE)
    steps = pl.cdiv(rows, max_tile_rows)
    if slab_bytes > (512 << 10):
        steps = max(steps, 4)
    if steps > 1 and steps % 2 == 1:
        steps += 1
    steps = max(1, min(steps, rows // _SUBLANE))
    tile_rows = pl.cdiv(rows // _SUBLANE, steps) * _SUBLANE
    grid = (pl.cdiv(rows, tile_rows),)

    # Scoped-VMEM limit: room for (1 in + 1 out) x 2 double buffers plus slack,
    # capped well under v7x's 64 MiB physical per-TC VMEM.
    vmem_limit = int(min(48 << 20, max(16 << 20, 5 * tile_rows * w * itemsize)))

    out_slab = pl.pallas_call(
        _piecewise_relu_kernel,
        out_shape=jax.ShapeDtypeStruct((rows, w), dtype),
        grid=grid,
        in_specs=[pl.BlockSpec((tile_rows, w), lambda i: (i, 0))],
        out_specs=pl.BlockSpec((tile_rows, w), lambda i: (i, 0)),
        compiler_params=pltpu.CompilerParams(
            dimension_semantics=("parallel",),
            vmem_limit_bytes=vmem_limit),
        cost_estimate=pl.CostEstimate(
            flops=2 * n_bulk,
            transcendentals=0,
            bytes_accessed=2 * n_bulk * itemsize),
    )(slab)

    if n_tail == 0:
        return out_slab.reshape(orig_shape)

    tail_out = _piecewise_relu_jnp(flat[n_bulk:])
    return jnp.concatenate([out_slab.reshape(-1), tail_out]).reshape(orig_shape)


def piecewise_relu_ref(x):
    return x + jnp.maximum((x - 1.0) / 2.0, 0.0) + jnp.maximum((-1.0 - x) / 2.0, 0.0)


if __name__ == "__main__":
    key = jax.random.PRNGKey(0)

    # NCHW-shaped input, consistent with a typical conv-net activation.
    x = jax.random.normal(key, (2, 4, 16, 16), dtype=jnp.float32) * 3.0
    y = jax.block_until_ready(piecewise_relu(x))
    assert y.shape == x.shape and y.dtype == x.dtype
    assert jnp.allclose(y, piecewise_relu_ref(x), atol=1e-6, rtol=1e-6), "mismatch"

    # Odd-sized input to exercise the ragged-tail path (bulk kernel + jnp tail).
    x2 = jax.random.normal(jax.random.PRNGKey(1), (3, 5, 7, 11), dtype=jnp.float32) * 3.0
    y2 = jax.block_until_ready(piecewise_relu(x2))
    assert y2.shape == x2.shape and y2.dtype == x2.dtype
    assert jnp.allclose(y2, piecewise_relu_ref(x2), atol=1e-6, rtol=1e-6), "mismatch (tail)"

    # Larger slab to exercise the multi-step pipelined grid path.
    x3 = jax.random.normal(jax.random.PRNGKey(2), (8, 64, 64, 64), dtype=jnp.float32) * 3.0
    y3 = jax.block_until_ready(piecewise_relu(x3))
    assert jnp.allclose(y3, piecewise_relu_ref(x3), atol=1e-6, rtol=1e-6), "mismatch (large)"

    print("KERNEL_OK")
</pallas_src>

<mosaic_0001>
module attributes {stable_mosaic.version = 11 : i64} {
  func.func @_piecewise_relu_kernel(%arg0: i32, %arg1: memref<8x256xf32, #tpu.memory_space<vmem>>, %arg2: memref<8x256xf32, #tpu.memory_space<vmem>>) attributes {dimension_semantics = [#tpu.dimension_semantics<parallel>], iteration_bounds = array<i64: 1>, scalar_prefetch = 0 : i64, scratch_operands = 0 : i64, tpu.core_type = #tpu.core_type<tc>, window_params = [{transform_indices = @transform_0, window_bounds = array<i64: 8, 256>}, {transform_indices = @transform_1, window_bounds = array<i64: 8, 256>}]} {
    %c0 = arith.constant 0 : index
    %c0_0 = arith.constant 0 : index
    %0 = vector.load %arg1[%c0, %c0_0] : memref<8x256xf32, #tpu.memory_space<vmem>>, vector<8x256xf32>
    %1 = math.absf %0 : vector<8x256xf32>
    %cst = arith.constant 1.000000e+00 : f32
    %2 = vector.broadcast %cst : f32 to vector<8x256xf32>
    %3 = arith.subf %1, %2 : vector<8x256xf32>
    %cst_1 = arith.constant 0.000000e+00 : f32
    %4 = vector.broadcast %cst_1 : f32 to vector<8x256xf32>
    %5 = arith.maximumf %3, %4 : vector<8x256xf32>
    %cst_2 = arith.constant 5.000000e-01 : f32
    %6 = vector.broadcast %cst_2 : f32 to vector<8x256xf32>
    %7 = arith.mulf %6, %5 : vector<8x256xf32>
    %8 = arith.addf %0, %7 : vector<8x256xf32>
    %c0_3 = arith.constant 0 : index
    %c0_4 = arith.constant 0 : index
    %9 = vector.load %arg2[%c0_3, %c0_4] : memref<8x256xf32, #tpu.memory_space<vmem>>, vector<8x256xf32>
    tpu.vector_store %arg2[%c0_3, %c0_4], %8 {strides = array<i32>} : memref<8x256xf32, #tpu.memory_space<vmem>>, vector<8x256xf32>,
    return
  }
  func.func @transform_0(%arg0: i32) -> (i32, i32) {
    %c0_i32 = arith.constant 0 : i32
    %c0_i32_0 = arith.constant 0 : i32
    return %arg0, %c0_i32 : i32, i32
  }
  func.func @transform_1(%arg0: i32) -> (i32, i32) {
    %c0_i32 = arith.constant 0 : i32
    %c0_i32_0 = arith.constant 0 : i32
    return %arg0, %c0_i32 : i32, i32
  }
}

</mosaic_0001>

<bundles_post_ra>
// kernel: tpu_custom_call.1
= control target key start
LH: loop header
LB: loop body
LE: loop exit
PB: predicated region body
PF: predicated region fallthrough
CT: control target
= control target key end

     0   :  { %6 = vsyncpa [#allocation3], 0  ;;  %s128_s0 = inlined_call_operand.hbm [shape: f32[8,256], index: 0, kind: input, shape index: {}]   ;;  %s129_s1 = inlined_call_operand.hbm [shape: f32[8,256], index: 1, kind: output, shape index: {}]  }
   0x1   :  { %7 = vsyncpa [#allocation4], 0  ;;  %s13_s8 = sshll.u32 %s128_s0, 4  ;;  %s110_s9 = smov [#allocation2]   ;;  %s14_s8 = int_to_ptr.hbm [resolvable:$true] %s13_s8 }
   0x2   :  { %s15_s10 = sshll.u32 %s110_s9, 4  ;;  %s16_s10 = int_to_ptr.vmem [resolvable:$true] %s15_s10 }
   0x3   :  { %18 = dma.hbm_to_vmem [thread:$0]  %s14_s8, 256, %s16_s10, [#allocation3]  }
   0x4   :  { %106 = dma.done.wait [#allocation3], 256  }
   0x5   :  { %107 = vsyncadd [#allocation3], 4294967040  ;;  %v23_v0 = vld [vmem:[#allocation2] sm:$0xff]  ;;  %v24_v1 = vld [vmem:[#allocation2 + $0x8] sm:$0xff]  ;;  %s111_s11 = smov [#allocation5]   ;;  %s44_s14 = sshll.u32 %s129_s1, 4  ;;  %s45_s14 = int_to_ptr.hbm [resolvable:$true] %s44_s14 }
   0x6   :  { %v25_v2 = vand.u32 2147483647, %v23_v0  ;;  %v26_v3 = vand.u32 2147483647, %v24_v1  ;;  %s42_s12 = sshll.u32 %s111_s11, 4  ;;  %s43_s12 = int_to_ptr.vmem [resolvable:$true] %s42_s12 }
   0x8   :  { %v54_v4 = vadd.f32 -1.0, %v25_v2  ;;  %v55_v5 = vadd.f32 -1.0, %v26_v3 }
   0xa   :  { %v29_v6 = vmax.f32 %v54_v4, 0.0  ;;  %v30_v7 = vmax.f32 %v55_v5, 0.0 }
   0xc   :  { %v31_v8 = vmul.f32 0.5, %v29_v6  ;;  %v32_v9 = vmul.f32 0.5, %v30_v7 }
   0xe   :  { %v33_v10 = vadd.f32 %v31_v8, %v23_v0  ;;  %v34_v11 = vadd.f32 %v32_v9, %v24_v1 }
  0x10   :  { %35 = vst [vmem:[#allocation5] sm:$0xff] %v33_v10 }
  0x11   :  { %36 = vst [vmem:[#allocation5 + $0x8] sm:$0xff] %v34_v11 }
  0x12   :  { %47 = dma.vmem_to_hbm [thread:$0]  %s43_s12, 256, %s45_s14, [#allocation4]  }
  0x13   :  { %108 = dma.done.wait [#allocation4], 256  }
  0x14   :  { %109 = vsyncadd [#allocation4], 4294967040 }
  0x15   :  { %52 = vsyncpa [#allocation3], 1 }
  0x16   :  { %53 = vsyncpa [#allocation4], 1 }

</bundles_post_ra>
